<compile_context>
chip_gen: v7x
topology: tpu7x:2x2x1
jax: 0.10.0
libtpu: 0.0.40
codegen_flags: <defaults>
</compile_context>

<pallas_src>
import jax
import jax.numpy as jnp
from jax.experimental import pallas as pl
from jax.experimental.pallas import tpu as pltpu

N_NFEAT = 32     # n_nfeat (input feature dim)
HIDDEN = 64      # hidden width from the module definition
BATCH = 64       # example "episode" size (e.g. n_way * (n_shot + n_query) rows)
TB_MAX = 512     # max rows per grid step (f32 out buffer = 128 KB/slot — far under VMEM limits)


def protonets_encoder_kernel(x_ref, w0_ref, b0_ref, wh_ref, bh_ref, o_ref):
    """Whole MLP hot path in VMEM: bf16 MXU dots, f32 accumulate + bias + ReLU on the VPU."""
    # layer 0: [tb, n_nfeat] @ [n_nfeat, 64]
    h = jnp.dot(x_ref[...], w0_ref[...], preferred_element_type=jnp.float32) + b0_ref[...]
    h = jnp.maximum(h, 0.0).astype(jnp.bfloat16)

    # hidden layers 1..3 (ReLU) — static unroll over the stacked [4,64,64] weight slab
    for l in range(3):
        h = jnp.dot(h, wh_ref[l], preferred_element_type=jnp.float32) + bh_ref[l]
        h = jnp.maximum(h, 0.0).astype(jnp.bfloat16)

    # final Linear has no ReLU (matches nn.Sequential ending in Linear)
    h = jnp.dot(h, wh_ref[3], preferred_element_type=jnp.float32) + bh_ref[3]

    o_ref[...] = h.astype(o_ref.dtype)


def protonets_forward(x, params, *, tb=TB_MAX):
    """params = list of (W [in,out] f32, b [1,out] f32) for the 5 linear layers.

    Runs the whole batch/episode through a single pallas_call with a batch grid;
    weights/biases are DMA'd once (constant block index) and stay resident across steps.
    """
    B, n_in = x.shape
    (w0, b0), hidden = params[0], params[1:]

    # Batch tile: as large as possible (<= tb), multiple of 8 sublanes; pad B to a tile multiple.
    tb = min(tb, max(8, ((B + 7) // 8) * 8))
    b_pad = ((B + tb - 1) // tb) * tb

    x_bf16 = x.astype(jnp.bfloat16)
    if b_pad != B:
        x_bf16 = jnp.pad(x_bf16, ((0, b_pad - B), (0, 0)))

    w0_bf16 = w0.astype(jnp.bfloat16)                                 # [n_in, 64] bf16
    b0_f32 = b0.astype(jnp.float32)                                   # [1, 64]   f32
    wh = jnp.stack([w.astype(jnp.bfloat16) for w, _ in hidden])       # [4, 64, 64] bf16
    bh = jnp.stack([b.astype(jnp.float32) for _, b in hidden])        # [4, 1, 64]  f32

    out = pl.pallas_call(
        protonets_encoder_kernel,
        out_shape=jax.ShapeDtypeStruct((b_pad, HIDDEN), jnp.float32),
        grid=(b_pad // tb,),
        in_specs=[
            pl.BlockSpec((tb, n_in), lambda i: (i, 0)),               # pipelined per-tile
            pl.BlockSpec(w0_bf16.shape, lambda i: (0, 0)),            # resident
            pl.BlockSpec(b0_f32.shape, lambda i: (0, 0)),             # resident
            pl.BlockSpec(wh.shape, lambda i: (0, 0, 0)),              # resident
            pl.BlockSpec(bh.shape, lambda i: (0, 0, 0)),              # resident
        ],
        out_specs=pl.BlockSpec((tb, HIDDEN), lambda i: (i, 0)),
        compiler_params=pltpu.CompilerParams(
            dimension_semantics=("parallel",),   # shard batch tiles across TCs on v7x
        ),
    )(x_bf16, w0_bf16, b0_f32, wh, bh)

    # TODO(synk): output stays [B, 64] (half-lane stores) to preserve the module's embedding
    # layout; a lane-dense [B/2, 128] repack would need a downstream-consumer layout change.
    return out[:B]


def init_params(key):
    """Deterministic init mimicking PyTorch nn.Linear (uniform +/- 1/sqrt(fan_in))."""
    dims = [(N_NFEAT, HIDDEN)] + [(HIDDEN, HIDDEN)] * 4
    params = []
    for (fan_in, fan_out) in dims:
        key, kw, kb = jax.random.split(key, 3)
        bound = 1.0 / jnp.sqrt(float(fan_in))
        w = jax.random.uniform(kw, (fan_in, fan_out), jnp.float32, -bound, bound)
        b = jax.random.uniform(kb, (1, fan_out), jnp.float32, -bound, bound)
        params.append((w, b))
    return params


def reference_forward(x, params):
    """Pure-JAX reference with the same bf16-input / f32-accumulate numerics as the kernel."""
    h = x.astype(jnp.bfloat16)
    for i, (w, b) in enumerate(params):
        h = jnp.dot(h, w.astype(jnp.bfloat16), preferred_element_type=jnp.float32) + b
        if i < len(params) - 1:
            h = jnp.maximum(h, 0.0).astype(jnp.bfloat16)
    return h


if __name__ == "__main__":
    key = jax.random.PRNGKey(0)
    key, kx = jax.random.split(key)
    x = jax.random.normal(kx, (BATCH, N_NFEAT), jnp.float32)
    params = init_params(key)

    fwd = jax.jit(protonets_forward, static_argnames=("tb",))
    out = jax.block_until_ready(fwd(x, params))

    ref = reference_forward(x, params)
    assert out.shape == (BATCH, HIDDEN)
    assert jnp.allclose(out, ref, atol=2e-3, rtol=2e-3), "mismatch vs. pure-JAX reference"

    print("KERNEL_OK")
</pallas_src>

<mosaic_0001>
module attributes {stable_mosaic.version = 11 : i64} {
  func.func @protonets_encoder_kernel(%arg0: i32, %arg1: memref<64x32xbf16, #tpu.memory_space<vmem>>, %arg2: memref<32x64xbf16, #tpu.memory_space<vmem>>, %arg3: memref<1x64xf32, #tpu.memory_space<vmem>>, %arg4: memref<4x64x64xbf16, #tpu.memory_space<vmem>>, %arg5: memref<4x1x64xf32, #tpu.memory_space<vmem>>, %arg6: memref<64x64xf32, #tpu.memory_space<vmem>>) attributes {dimension_semantics = [#tpu.dimension_semantics<parallel>], iteration_bounds = array<i64: 1>, scalar_prefetch = 0 : i64, scratch_operands = 0 : i64, tpu.core_type = #tpu.core_type<tc>, window_params = [{transform_indices = @transform_0, window_bounds = array<i64: 64, 32>}, {pipeline_mode = #tpu.pipeline_mode<synchronous>, transform_indices = @transform_1, window_bounds = array<i64: 32, 64>}, {pipeline_mode = #tpu.pipeline_mode<synchronous>, transform_indices = @transform_2, window_bounds = array<i64: 1, 64>}, {pipeline_mode = #tpu.pipeline_mode<synchronous>, transform_indices = @transform_3, window_bounds = array<i64: 4, 64, 64>}, {pipeline_mode = #tpu.pipeline_mode<synchronous>, transform_indices = @transform_4, window_bounds = array<i64: 4, 1, 64>}, {transform_indices = @transform_5, window_bounds = array<i64: 64, 64>}]} {
    %c0 = arith.constant 0 : index
    %c0_0 = arith.constant 0 : index
    %0 = vector.load %arg1[%c0, %c0_0] : memref<64x32xbf16, #tpu.memory_space<vmem>>, vector<64x32xbf16>
    %c0_1 = arith.constant 0 : index
    %c0_2 = arith.constant 0 : index
    %1 = vector.load %arg2[%c0_1, %c0_2] : memref<32x64xbf16, #tpu.memory_space<vmem>>, vector<32x64xbf16>
    %cst = arith.constant dense<0.000000e+00> : vector<64x64xf32>
    %2 = tpu.matmul %0, %1, %cst {dimension_numbers = #tpu.dot_dimension_numbers<[1], [0], [0], [1], [0, 0, 1, 1], [], []>} : vector<64x32xbf16>, vector<32x64xbf16>, vector<64x64xf32> -> vector<64x64xf32>
    %c0_3 = arith.constant 0 : index
    %c0_4 = arith.constant 0 : index
    %3 = vector.load %arg3[%c0_3, %c0_4] : memref<1x64xf32, #tpu.memory_space<vmem>>, vector<1x64xf32>
    %4 = vector.broadcast %3 : vector<1x64xf32> to vector<64x64xf32>
    %5 = arith.addf %2, %4 : vector<64x64xf32>
    %cst_5 = arith.constant 0.000000e+00 : f32
    %6 = vector.broadcast %cst_5 : f32 to vector<64x64xf32>
    %7 = arith.maximumf %5, %6 : vector<64x64xf32>
    %8 = arith.truncf %7 : vector<64x64xf32> to vector<64x64xbf16>
    %c0_6 = arith.constant 0 : index
    %c0_7 = arith.constant 0 : index
    %c0_8 = arith.constant 0 : index
    %9 = vector.load %arg4[%c0_6, %c0_7, %c0_8] : memref<4x64x64xbf16, #tpu.memory_space<vmem>>, vector<1x64x64xbf16>
    %10 = vector.shape_cast %9 : vector<1x64x64xbf16> to vector<64x64xbf16>
    %cst_9 = arith.constant dense<0.000000e+00> : vector<64x64xf32>
    %11 = tpu.matmul %8, %10, %cst_9 {dimension_numbers = #tpu.dot_dimension_numbers<[1], [0], [0], [1], [0, 0, 1, 1], [], []>} : vector<64x64xbf16>, vector<64x64xbf16>, vector<64x64xf32> -> vector<64x64xf32>
    %c0_10 = arith.constant 0 : index
    %c0_11 = arith.constant 0 : index
    %c0_12 = arith.constant 0 : index
    %12 = vector.load %arg5[%c0_10, %c0_11, %c0_12] : memref<4x1x64xf32, #tpu.memory_space<vmem>>, vector<1x1x64xf32>
    %13 = vector.shape_cast %12 : vector<1x1x64xf32> to vector<1x64xf32>
    %14 = vector.broadcast %13 : vector<1x64xf32> to vector<64x64xf32>
    %15 = arith.addf %11, %14 : vector<64x64xf32>
    %cst_13 = arith.constant 0.000000e+00 : f32
    %16 = vector.broadcast %cst_13 : f32 to vector<64x64xf32>
    %17 = arith.maximumf %15, %16 : vector<64x64xf32>
    %18 = arith.truncf %17 : vector<64x64xf32> to vector<64x64xbf16>
    %c1 = arith.constant 1 : index
    %c0_14 = arith.constant 0 : index
    %c0_15 = arith.constant 0 : index
    %19 = vector.load %arg4[%c1, %c0_14, %c0_15] : memref<4x64x64xbf16, #tpu.memory_space<vmem>>, vector<1x64x64xbf16>
    %20 = vector.shape_cast %19 : vector<1x64x64xbf16> to vector<64x64xbf16>
    %cst_16 = arith.constant dense<0.000000e+00> : vector<64x64xf32>
    %21 = tpu.matmul %18, %20, %cst_16 {dimension_numbers = #tpu.dot_dimension_numbers<[1], [0], [0], [1], [0, 0, 1, 1], [], []>} : vector<64x64xbf16>, vector<64x64xbf16>, vector<64x64xf32> -> vector<64x64xf32>
    %c1_17 = arith.constant 1 : index
    %c0_18 = arith.constant 0 : index
    %c0_19 = arith.constant 0 : index
    %22 = vector.load %arg5[%c1_17, %c0_18, %c0_19] : memref<4x1x64xf32, #tpu.memory_space<vmem>>, vector<1x1x64xf32>
    %23 = vector.shape_cast %22 : vector<1x1x64xf32> to vector<1x64xf32>
    %24 = vector.broadcast %23 : vector<1x64xf32> to vector<64x64xf32>
    %25 = arith.addf %21, %24 : vector<64x64xf32>
    %cst_20 = arith.constant 0.000000e+00 : f32
    %26 = vector.broadcast %cst_20 : f32 to vector<64x64xf32>
    %27 = arith.maximumf %25, %26 : vector<64x64xf32>
    %28 = arith.truncf %27 : vector<64x64xf32> to vector<64x64xbf16>
    %c2 = arith.constant 2 : index
    %c0_21 = arith.constant 0 : index
    %c0_22 = arith.constant 0 : index
    %29 = vector.load %arg4[%c2, %c0_21, %c0_22] : memref<4x64x64xbf16, #tpu.memory_space<vmem>>, vector<1x64x64xbf16>
    %30 = vector.shape_cast %29 : vector<1x64x64xbf16> to vector<64x64xbf16>
    %cst_23 = arith.constant dense<0.000000e+00> : vector<64x64xf32>
    %31 = tpu.matmul %28, %30, %cst_23 {dimension_numbers = #tpu.dot_dimension_numbers<[1], [0], [0], [1], [0, 0, 1, 1], [], []>} : vector<64x64xbf16>, vector<64x64xbf16>, vector<64x64xf32> -> vector<64x64xf32>
    %c2_24 = arith.constant 2 : index
    %c0_25 = arith.constant 0 : index
    %c0_26 = arith.constant 0 : index
    %32 = vector.load %arg5[%c2_24, %c0_25, %c0_26] : memref<4x1x64xf32, #tpu.memory_space<vmem>>, vector<1x1x64xf32>
    %33 = vector.shape_cast %32 : vector<1x1x64xf32> to vector<1x64xf32>
    %34 = vector.broadcast %33 : vector<1x64xf32> to vector<64x64xf32>
    %35 = arith.addf %31, %34 : vector<64x64xf32>
    %cst_27 = arith.constant 0.000000e+00 : f32
    %36 = vector.broadcast %cst_27 : f32 to vector<64x64xf32>
    %37 = arith.maximumf %35, %36 : vector<64x64xf32>
    %38 = arith.truncf %37 : vector<64x64xf32> to vector<64x64xbf16>
    %c3 = arith.constant 3 : index
    %c0_28 = arith.constant 0 : index
    %c0_29 = arith.constant 0 : index
    %39 = vector.load %arg4[%c3, %c0_28, %c0_29] : memref<4x64x64xbf16, #tpu.memory_space<vmem>>, vector<1x64x64xbf16>
    %40 = vector.shape_cast %39 : vector<1x64x64xbf16> to vector<64x64xbf16>
    %cst_30 = arith.constant dense<0.000000e+00> : vector<64x64xf32>
    %41 = tpu.matmul %38, %40, %cst_30 {dimension_numbers = #tpu.dot_dimension_numbers<[1], [0], [0], [1], [0, 0, 1, 1], [], []>} : vector<64x64xbf16>, vector<64x64xbf16>, vector<64x64xf32> -> vector<64x64xf32>
    %c3_31 = arith.constant 3 : index
    %c0_32 = arith.constant 0 : index
    %c0_33 = arith.constant 0 : index
    %42 = vector.load %arg5[%c3_31, %c0_32, %c0_33] : memref<4x1x64xf32, #tpu.memory_space<vmem>>, vector<1x1x64xf32>
    %43 = vector.shape_cast %42 : vector<1x1x64xf32> to vector<1x64xf32>
    %44 = vector.broadcast %43 : vector<1x64xf32> to vector<64x64xf32>
    %45 = arith.addf %41, %44 : vector<64x64xf32>
    %c0_34 = arith.constant 0 : index
    %c0_35 = arith.constant 0 : index
    %46 = vector.load %arg6[%c0_34, %c0_35] : memref<64x64xf32, #tpu.memory_space<vmem>>, vector<64x64xf32>
    tpu.vector_store %arg6[%c0_34, %c0_35], %45 {strides = array<i32>} : memref<64x64xf32, #tpu.memory_space<vmem>>, vector<64x64xf32>,
    return
  }
  func.func @transform_0(%arg0: i32) -> (i32, i32) {
    %c0_i32 = arith.constant 0 : i32
    %c0_i32_0 = arith.constant 0 : i32
    return %arg0, %c0_i32 : i32, i32
  }
  func.func @transform_1(%arg0: i32) -> (i32, i32) {
    %c0_i32 = arith.constant 0 : i32
    %c0_i32_0 = arith.constant 0 : i32
    %c0_i32_1 = arith.constant 0 : i32
    return %c0_i32, %c0_i32_0 : i32, i32
  }
  func.func @transform_2(%arg0: i32) -> (i32, i32) {
    %c0_i32 = arith.constant 0 : i32
    %c0_i32_0 = arith.constant 0 : i32
    %c0_i32_1 = arith.constant 0 : i32
    return %c0_i32, %c0_i32_0 : i32, i32
  }
  func.func @transform_3(%arg0: i32) -> (i32, i32, i32) {
    %c0_i32 = arith.constant 0 : i32
    %c0_i32_0 = arith.constant 0 : i32
    %c0_i32_1 = arith.constant 0 : i32
    %c0_i32_2 = arith.constant 0 : i32
    return %c0_i32, %c0_i32_0, %c0_i32_1 : i32, i32, i32
  }
  func.func @transform_4(%arg0: i32) -> (i32, i32, i32) {
    %c0_i32 = arith.constant 0 : i32
    %c0_i32_0 = arith.constant 0 : i32
    %c0_i32_1 = arith.constant 0 : i32
    %c0_i32_2 = arith.constant 0 : i32
    return %c0_i32, %c0_i32_0, %c0_i32_1 : i32, i32, i32
  }
  func.func @transform_5(%arg0: i32) -> (i32, i32) {
    %c0_i32 = arith.constant 0 : i32
    %c0_i32_0 = arith.constant 0 : i32
    return %arg0, %c0_i32 : i32, i32
  }
}

</mosaic_0001>

<bundles_post_ra>
// kernel: protonets_forward.1
= control target key start
LH: loop header
LB: loop body
LE: loop exit
PB: predicated region body
PF: predicated region fallthrough
CT: control target
= control target key end

     0   :  { %vm73_vm0 = vcmask 261120   ;;  %s1085_s0 = inlined_call_operand.vmem [shape: bf16[64,32], index: 0, kind: input, shape index: {}]   ;;  %s1086_s1 = inlined_call_operand.vmem [shape: bf16[32,64], index: 1, kind: input, shape index: {}]   ;;  %s1087_s2 = inlined_call_operand.vmem [shape: f32[1,64], index: 2, kind: input, shape index: {}]   ;;  %s1088_s3 = inlined_call_operand.vmem [shape: bf16[4,64,64], index: 3, kind: input, shape index: {}]   ;;  %s1089_s4 = inlined_call_operand.vmem [shape: f32[4,1,64], index: 4, kind: input, shape index: {}]   ;;  %s1090_s5 = inlined_call_operand.hbm [shape: f32[64,64], index: 5, kind: output, shape index: {}]  }
   0x1   :  { %v885_v0 = vld [vmem:[%s1086_s1] sm:$0xff]   ;;  %v886_v1 = vld [vmem:[%s1086_s1 + $0x8] sm:$0xff]   ;;  %v889_v4 = vld [vmem:[%s1085_s0 + $0x10] sm:$0xff]  }
   0x2   :  { %806 = vmatprep.subr.bf16.mxu0 %v885_v0  ;;  %v887_v2 = vld [vmem:[%s1085_s0] sm:$0xff]   ;;  %v888_v3 = vld [vmem:[%s1085_s0 + $0x8] sm:$0xff]   ;;  %v890_v7 = vld [vmem:[%s1085_s0 + $0x18] sm:$0xff]  }
   0x3   :  { %807 = vmatpush3.bf16.msra.mxu0 %v885_v0  ;;  %810 = vmatprep.mubr.msk.bf16.mxu0 %vm73_vm0, %v887_v2  ;;  %v891_v5 = vld [vmem:[%s1088_s3] sm:$0xff]   ;;  %v892_v6 = vld [vmem:[%s1088_s3 + $0x8] sm:$0xff]  }
   0x4   :  { %808 = vmatprep.subr.bf16.mxu0 %v886_v1  ;;  %818 = vmatprep.subr.bf16.mxu1 %v891_v5 }
   0x5   :  { %819 = vmatpush3.bf16.msra.mxu1 %v891_v5 }
   0x6   :  { %820 = vmatprep.subr.bf16.mxu1 %v892_v6 }
   0x7   :  { %809 = vmatpush3.bf16.msra.mxu0 %v886_v1 }
   0x9   :  { %821 = vmatpush3.bf16.msra.mxu1 %v892_v6 }
   0xa   :  { %811 = vmatmul.mubr.msk.bf16.vlgmr.msra.gmra.mrb[0].mxu0 %vm73_vm0, %v888_v3 }
   0xb   :  { %814 = vmatprep.mubr.msk.bf16.mxu0 %vm73_vm0, %v889_v4 }
   0xc   :  { %10 = vsyncpa [#allocation3], 0  ;;  %v893_v8 = vld [vmem:[%s1088_s3 + $0x10] sm:$0xff]   ;;  %v894_v9 = vld [vmem:[%s1088_s3 + $0x18] sm:$0xff]   ;;  %vm202_vm1 = vcmask 523264   ;;  %s931_s16 = smov [#allocation2]  }
   0xd   :  { %822 = vmatprep.subr.bf16.mxu1 %v893_v8  ;;  %v895_v10 = vld [vmem:[%s1088_s3 + $0x20] sm:$0xff]   ;;  %v896_v11 = vld [vmem:[%s1088_s3 + $0x28] sm:$0xff]   ;;  %v897_v41 = vld [vmem:[%s1088_s3 + $0x30] sm:$0xff]  }
   0xe   :  { %823 = vmatpush3.bf16.msra.mxu1 %v893_v8  ;;  %834 = vmatprep.subr.bf16.mxu0 %v895_v10  ;;  %v694_v12 = vld [vmem:[%s1087_s2] ss:$0 sm:$0xff]  ;;  %v898_v42 = vld [vmem:[%s1088_s3 + $0x38] sm:$0xff]   ;;  %v900_v44 = vld [vmem:[%s1088_s3 + $0x48] sm:$0xff]   ;;  %s683_s2 = sshll.u32 %s931_s16, 4  ;;  %s684_s2 = int_to_ptr.vmem [resolvable:$true] %s683_s2 }
   0xf   :  { %824 = vmatprep.subr.bf16.mxu1 %v894_v9  ;;  %835 = vmatpush3.bf16.msra.mxu0 %v895_v10  ;;  %v899_v43 = vld [vmem:[%s1088_s3 + $0x40] sm:$0xff]   ;;  %v901_v10 = vld [vmem:[%s1088_s3 + $0x50] sm:$0xff]   ;;  %p912_p1 = scmp.lt.s32.totalorder %s684_s2, %s684_s2 }
  0x10   :  { %836 = vmatprep.subr.bf16.mxu0 %v896_v11  ;;  %v705_v45 = vld [vmem:[%s1089_s4] ss:$0 sm:$0xff] }
  0x12   :  { %815 = vmatmul.mubr.msk.bf16.gmra.mrb[4].mxu0 %vm73_vm0, %v890_v7  ;;  %825 = vmatpush3.bf16.msra.mxu1 %v894_v9 }
  0x13   :  { %837 = vmatpush3.bf16.msra.mxu0 %v896_v11  ;;  %850 = vmatprep.subr.bf16.mxu1 %v899_v43  ;;  %v902_v11 = vld [vmem:[%s1088_s3 + $0x58] sm:$0xff]  }
  0x14   :  { %838 = vmatprep.subr.bf16.mxu0 %v897_v41 }
  0x17   :  { %839 = vmatpush3.bf16.msra.mxu0 %v897_v41 }
  0x18   :  { %840 = vmatprep.subr.bf16.mxu0 %v898_v42 }
  0x1b   :  { %841 = vmatpush3.bf16.msra.mxu0 %v898_v42 }
  0xdd   :  { %v812_v13 = vpop.f32.mrb[0].mxu0 }
  0xde   :  { %v129_v14 = vadd.f32 %v812_v13, %v694_v12  ;;  %v120_v15 = vpop.f32.mrb[1].mxu0  ;;  %v904_v13 = vld [vmem:[%s1088_s3 + $0x68] sm:$0xff]  }
  0xdf   :  { %v121_v16 = vadd.f32 %v694_v12, %v120_v15  ;;  %v813_v17 = vpop.f32.mrb[2].mxu0 }
  0xe0   :  { %v132_v18 = vadd.f32 %v813_v17, %v694_v12  ;;  %v123_v19 = vpop.f32.mrb[3].mxu0  ;;  %v153_v21 = vmax.f32 %v129_v14, 0.0  ;;  %v723_v14 = vld [vmem:[%s1089_s4 + $0x1] ss:$0 sm:$0xff] }
  0xe1   :  { %v124_v20 = vadd.f32 %v694_v12, %v123_v19  ;;  %v151_v23 = vmax.f32 %v121_v16, 0.0 }
  0xe2   :  { %v154_v22 = vmax.f32 %v132_v18, 0.0 }
  0xe3   :  { %v152_v24 = vmax.f32 %v124_v20, 0.0 }
  0xe4   :  { %v160_v25 = vpack.c.bf16 %v154_v22, %v153_v21 }
  0xe5   :  { %v816_v26 = vpop.f32.mrb[4].mxu0  ;;  %v159_v27 = vpack.c.bf16 %v152_v24, %v151_v23 }
  0xe6   :  { %v145_v28 = vadd.f32 %v816_v26, %v694_v12  ;;  %v136_v29 = vpop.f32.mrb[5].mxu0 }
  0xe7   :  { %v137_v30 = vadd.f32 %v694_v12, %v136_v29  ;;  %v817_v31 = vpop.f32.mrb[6].mxu0  ;;  %826 = vmatprep.mubr.msk.bf16.mxu1 %vm202_vm1, %v159_v27 }
  0xe8   :  { %v148_v32 = vadd.f32 %v817_v31, %v694_v12  ;;  %v139_v33 = vpop.f32.mrb[7].mxu0  ;;  %827 = vmatmul.mubr.msk.bf16.vlgmr.msra.gmra.mrb[0].mxu1 %vm202_vm1, %v160_v25  ;;  %v157_v35 = vmax.f32 %v145_v28, 0.0 }
  0xe9   :  { %v140_v34 = vadd.f32 %v694_v12, %v139_v33  ;;  %v155_v37 = vmax.f32 %v137_v30, 0.0  ;;  %851 = vmatpush3.bf16.msra.mxu1 %v899_v43  ;;  %v903_v12 = vld [vmem:[%s1088_s3 + $0x60] sm:$0xff]   ;;  %v905_v43 = vld [vmem:[%s1088_s3 + $0x70] sm:$0xff]  }
  0xea   :  { %v158_v36 = vmax.f32 %v148_v32, 0.0  ;;  %852 = vmatprep.subr.bf16.mxu1 %v900_v44  ;;  %866 = vmatprep.subr.bf16.mxu0 %v903_v12 }
  0xeb   :  { %v156_v38 = vmax.f32 %v140_v34, 0.0 }
  0xec   :  { %v162_v39 = vpack.c.bf16 %v158_v36, %v157_v35 }
  0xed   :  { %v161_v40 = vpack.c.bf16 %v156_v38, %v155_v37  ;;  %853 = vmatpush3.bf16.msra.mxu1 %v900_v44  ;;  %v906_v44 = vld [vmem:[%s1088_s3 + $0x78] sm:$0xff]  }
  0xee   :  { %854 = vmatprep.subr.bf16.mxu1 %v901_v10 }
  0xef   :  { %830 = vmatprep.mubr.msk.bf16.mxu1 %vm202_vm1, %v161_v40 }
  0xf0   :  { %831 = vmatmul.mubr.msk.bf16.gmra.mrb[4].mxu1 %vm202_vm1, %v162_v39 }
  0xf1   :  { %855 = vmatpush3.bf16.msra.mxu1 %v901_v10  ;;  %v759_v10 = vld [vmem:[%s1089_s4 + $0x3] ss:$0 sm:$0xff] }
  0xf2   :  { %856 = vmatprep.subr.bf16.mxu1 %v902_v11 }
  0xf5   :  { %857 = vmatpush3.bf16.msra.mxu1 %v902_v11 }
 0x1bb   :  { %v828_v46 = vpop.f32.mrb[0].mxu1 }
 0x1bc   :  { %v258_v47 = vadd.f32 %v828_v46, %v705_v45  ;;  %v249_v48 = vpop.f32.mrb[1].mxu1 }
 0x1bd   :  { %v250_v49 = vadd.f32 %v705_v45, %v249_v48  ;;  %v829_v50 = vpop.f32.mrb[2].mxu1 }
 0x1be   :  { %v261_v51 = vadd.f32 %v829_v50, %v705_v45  ;;  %v252_v52 = vpop.f32.mrb[3].mxu1  ;;  %v282_v54 = vmax.f32 %v258_v47, 0.0 }
 0x1bf   :  { %v253_v53 = vadd.f32 %v705_v45, %v252_v52  ;;  %v280_v56 = vmax.f32 %v250_v49, 0.0 }
 0x1c0   :  { %v283_v55 = vmax.f32 %v261_v51, 0.0 }
 0x1c1   :  { %v281_v57 = vmax.f32 %v253_v53, 0.0 }
 0x1c2   :  { %v289_v58 = vpack.c.bf16 %v283_v55, %v282_v54 }
 0x1c3   :  { %v288_v59 = vpack.c.bf16 %v281_v57, %v280_v56  ;;  %v832_v60 = vpop.f32.mrb[4].mxu1 }
 0x1c4   :  { %v274_v61 = vadd.f32 %v832_v60, %v705_v45  ;;  %v265_v62 = vpop.f32.mrb[5].mxu1 }
 0x1c5   :  { %v266_v63 = vadd.f32 %v705_v45, %v265_v62  ;;  %v833_v0 = vpop.f32.mrb[6].mxu1  ;;  %842 = vmatprep.mubr.msk.bf16.mxu0 %vm202_vm1, %v288_v59 }
 0x1c6   :  { %v277_v1 = vadd.f32 %v833_v0, %v705_v45  ;;  %v268_v2 = vpop.f32.mrb[7].mxu1  ;;  %843 = vmatmul.mubr.msk.bf16.vlgmr.msra.gmra.mrb[8].mxu0 %vm202_vm1, %v289_v58  ;;  %v286_v4 = vmax.f32 %v274_v61, 0.0 }
 0x1c7   :  { %v269_v3 = vadd.f32 %v705_v45, %v268_v2  ;;  %v284_v6 = vmax.f32 %v266_v63, 0.0  ;;  %867 = vmatpush3.bf16.msra.mxu0 %v903_v12  ;;  %v741_v45 = vld [vmem:[%s1089_s4 + $0x2] ss:$0 sm:$0xff]  ;;  %s907_s4 = scalar_lea.vmem %s684_s2, 1024 }
 0x1c8   :  { %v287_v5 = vmax.f32 %v277_v1, 0.0  ;;  %868 = vmatprep.subr.bf16.mxu0 %v904_v13  ;;  %p908_p0 = scmp.ne.s32.totalorder %s684_s2, %s907_s4  ;;  %p913_p2 = scmp.lt.s32.totalorder %s907_s4, %s907_s4 }
 0x1c9   :  { %v285_v7 = vmax.f32 %v269_v3, 0.0 }
 0x1ca   :  { %v291_v8 = vpack.c.bf16 %v287_v5, %v286_v4  ;;  %p914_p3 = por %p913_p2, %p912_p1 }
 0x1cb   :  { %v290_v9 = vpack.c.bf16 %v285_v7, %v284_v6  ;;  %869 = vmatpush3.bf16.msra.mxu0 %v904_v13 }
 0x1cc   :  { %870 = vmatprep.subr.bf16.mxu0 %v905_v43  ;;  %p915_p4 = pnand %p914_p3, %p908_p0 }
 0x1cd   :  { %846 = vmatprep.mubr.msk.bf16.mxu0 %vm202_vm1, %v290_v9 }
 0x1ce   :  { %847 = vmatmul.mubr.msk.bf16.gmra.mrb[12].mxu0 %vm202_vm1, %v291_v8 }
 0x1cf   :  { %871 = vmatpush3.bf16.msra.mxu0 %v905_v43 }
 0x1d0   :  { %872 = vmatprep.subr.bf16.mxu0 %v906_v44 }
 0x1d3   :  { %873 = vmatpush3.bf16.msra.mxu0 %v906_v44 }
 0x299   :  { %v844_v15 = vpop.f32.mrb[8].mxu0 }
 0x29a   :  { %v388_v16 = vadd.f32 %v844_v15, %v723_v14  ;;  %v379_v17 = vpop.f32.mrb[9].mxu0 }
 0x29b   :  { %v380_v18 = vadd.f32 %v723_v14, %v379_v17  ;;  %v845_v19 = vpop.f32.mrb[10].mxu0 }
 0x29c   :  { %v391_v20 = vadd.f32 %v845_v19, %v723_v14  ;;  %v382_v21 = vpop.f32.mrb[11].mxu0  ;;  %v412_v23 = vmax.f32 %v388_v16, 0.0 }
 0x29d   :  { %v383_v22 = vadd.f32 %v723_v14, %v382_v21  ;;  %v410_v25 = vmax.f32 %v380_v18, 0.0 }
 0x29e   :  { %v413_v24 = vmax.f32 %v391_v20, 0.0 }
 0x29f   :  { %v411_v26 = vmax.f32 %v383_v22, 0.0 }
 0x2a0   :  { %v419_v27 = vpack.c.bf16 %v413_v24, %v412_v23 }
 0x2a1   :  { %v418_v28 = vpack.c.bf16 %v411_v26, %v410_v25  ;;  %v848_v29 = vpop.f32.mrb[12].mxu0 }
 0x2a2   :  { %v404_v30 = vadd.f32 %v848_v29, %v723_v14  ;;  %v395_v31 = vpop.f32.mrb[13].mxu0 }
 0x2a3   :  { %v396_v32 = vadd.f32 %v723_v14, %v395_v31  ;;  %v849_v33 = vpop.f32.mrb[14].mxu0  ;;  %858 = vmatprep.mubr.msk.bf16.mxu1 %vm202_vm1, %v418_v28 }
 0x2a4   :  { %v407_v34 = vadd.f32 %v849_v33, %v723_v14  ;;  %v398_v35 = vpop.f32.mrb[15].mxu0  ;;  %859 = vmatmul.mubr.msk.bf16.vlgmr.msra.gmra.mrb[8].mxu1 %vm202_vm1, %v419_v27  ;;  %v416_v37 = vmax.f32 %v404_v30, 0.0 }
 0x2a5   :  { %v399_v36 = vadd.f32 %v723_v14, %v398_v35  ;;  %v414_v39 = vmax.f32 %v396_v32, 0.0 }
 0x2a6   :  { %v417_v38 = vmax.f32 %v407_v34, 0.0 }
 0x2a7   :  { %v415_v40 = vmax.f32 %v399_v36, 0.0 }
 0x2a8   :  { %v421_v41 = vpack.c.bf16 %v417_v38, %v416_v37 }
 0x2a9   :  { %v420_v42 = vpack.c.bf16 %v415_v40, %v414_v39 }
 0x2ab   :  { %862 = vmatprep.mubr.msk.bf16.mxu1 %vm202_vm1, %v420_v42 }
 0x2ac   :  { %863 = vmatmul.mubr.msk.bf16.gmra.mrb[12].mxu1 %vm202_vm1, %v421_v41 }
 0x377   :  { %v860_v46 = vpop.f32.mrb[8].mxu1 }
 0x378   :  { %v518_v47 = vadd.f32 %v860_v46, %v741_v45  ;;  %v509_v48 = vpop.f32.mrb[9].mxu1 }
 0x379   :  { %v510_v49 = vadd.f32 %v741_v45, %v509_v48  ;;  %v861_v50 = vpop.f32.mrb[10].mxu1 }
 0x37a   :  { %v521_v51 = vadd.f32 %v861_v50, %v741_v45  ;;  %v512_v52 = vpop.f32.mrb[11].mxu1  ;;  %v542_v54 = vmax.f32 %v518_v47, 0.0 }
 0x37b   :  { %v513_v53 = vadd.f32 %v741_v45, %v512_v52  ;;  %v540_v56 = vmax.f32 %v510_v49, 0.0 }
 0x37c   :  { %v543_v55 = vmax.f32 %v521_v51, 0.0 }
 0x37d   :  { %v541_v57 = vmax.f32 %v513_v53, 0.0 }
 0x37e   :  { %v549_v58 = vpack.c.bf16 %v543_v55, %v542_v54 }
 0x37f   :  { %v548_v59 = vpack.c.bf16 %v541_v57, %v540_v56  ;;  %v864_v60 = vpop.f32.mrb[12].mxu1 }
 0x380   :  { %v534_v61 = vadd.f32 %v864_v60, %v741_v45  ;;  %v525_v62 = vpop.f32.mrb[13].mxu1 }
 0x381   :  { %v526_v63 = vadd.f32 %v741_v45, %v525_v62  ;;  %v865_v0 = vpop.f32.mrb[14].mxu1  ;;  %874 = vmatprep.mubr.msk.bf16.mxu0 %vm202_vm1, %v548_v59 }
 0x382   :  { %v537_v1 = vadd.f32 %v865_v0, %v741_v45  ;;  %v528_v2 = vpop.f32.mrb[15].mxu1  ;;  %875 = vmatmul.mubr.msk.bf16.vlgmr.msra.gmra.mrb[16].mxu0 %vm202_vm1, %v549_v58  ;;  %v546_v4 = vmax.f32 %v534_v61, 0.0 }
 0x383   :  { %v529_v3 = vadd.f32 %v741_v45, %v528_v2  ;;  %v544_v6 = vmax.f32 %v526_v63, 0.0 }
 0x384   :  { %v547_v5 = vmax.f32 %v537_v1, 0.0 }
 0x385   :  { %v545_v7 = vmax.f32 %v529_v3, 0.0 }
 0x386   :  { %v551_v8 = vpack.c.bf16 %v547_v5, %v546_v4 }
 0x387   :  { %v550_v9 = vpack.c.bf16 %v545_v7, %v544_v6 }
 0x389   :  { %878 = vmatprep.mubr.msk.bf16.mxu0 %vm202_vm1, %v550_v9 }
 0x38a   :  { %879 = vmatmul.mubr.msk.bf16.gmra.mrb[20].mxu0 %vm202_vm1, %v551_v8 }
 0x455   :  { %v876_v11 = vpop.f32.mrb[16].mxu0 }
 0x456   :  { %v648_v12 = vadd.f32 %v876_v11, %v759_v10  ;;  %v639_v13 = vpop.f32.mrb[17].mxu0 }
 0x457   :  { %v640_v14 = vadd.f32 %v759_v10, %v639_v13  ;;  %v877_v15 = vpop.f32.mrb[18].mxu0 }
 0x458   :  { %672 = vst.msk [vmem:[#allocation2 + $0x10] sm:$0xff] %vm202_vm1, %v648_v12  ;;  %v651_v16 = vadd.f32 %v877_v15, %v759_v10  ;;  %v642_v17 = vpop.f32.mrb[19].mxu0 }
 0x459   :  { %670 = vst.msk [vmem:[#allocation2] sm:$0xff] %vm202_vm1, %v640_v14  ;;  %v643_v18 = vadd.f32 %v759_v10, %v642_v17 }
 0x45a   :  { %673 = vst.msk [vmem:[#allocation2 + $0x18] sm:$0xff] %vm202_vm1, %v651_v16 }
 0x45b   :  { %671 = vst.msk [vmem:[#allocation2 + $0x8] sm:$0xff] %vm202_vm1, %v643_v18 }
 0x45d   :  { %v880_v19 = vpop.f32.mrb[20].mxu0 }
 0x45e   :  { %v664_v20 = vadd.f32 %v880_v19, %v759_v10  ;;  %v655_v21 = vpop.f32.mrb[21].mxu0 }
 0x45f   :  { %v656_v22 = vadd.f32 %v759_v10, %v655_v21  ;;  %v881_v23 = vpop.f32.mrb[22].mxu0 }
 0x460   :  { %676 = vst.msk [vmem:[#allocation2 + $0x30] sm:$0xff] %vm202_vm1, %v664_v20  ;;  %v667_v24 = vadd.f32 %v881_v23, %v759_v10  ;;  %v658_v25 = vpop.f32.mrb[23].mxu0 }
 0x461   :  { %674 = vst.msk [vmem:[#allocation2 + $0x20] sm:$0xff] %vm202_vm1, %v656_v22  ;;  %v659_v26 = vadd.f32 %v759_v10, %v658_v25 }
 0x462   :  { %677 = vst.msk [vmem:[#allocation2 + $0x38] sm:$0xff] %vm202_vm1, %v667_v24 }
 0x463   :  { %675 = vst.msk [vmem:[#allocation2 + $0x28] sm:$0xff] %vm202_vm1, %v659_v26 }
 0x464   :  { %918 = shalt.err (!%p915_p4)
}
 0x465   :  { %s919_s19 = scalar_lea.hbm %s1090_s5, 1024 }
 0x466   :  { %p920_p5 = scmp.ne.s32.totalorder %s1090_s5, %s919_s19  ;;  %p923_p6 = scmp.lt.u32.totalorder %s919_s19, %s1090_s5 }
 0x468   :  { %p925_p7 = pnand %p923_p6, %p920_p5 }
 0x46a   :  { %928 = shalt.err (!%p925_p7)
}
 0x46b   :  { %s932_s24 = smov 128   ;;  %s933_s25 = smov 8  }
 0x46c   :  { %689 = dma.vmem_to_hbm [thread:$0]  %s684_s2, 1024, %s1090_s5, [#allocation3], %s932_s24, %s932_s24, %s933_s25  }
 0x46d   :  { %929 = dma.done.wait [#allocation3], 1024  }
 0x46e   :  { %930 = vsyncadd [#allocation3], 4294966272 }
 0x46f   :  { %693 = vsyncpa [#allocation3], 1 }

</bundles_post_ra>
